<compile_context>
chip_gen: v6e
topology: v6e:2x2x1
jax: 0.10.0
libtpu: 0.0.40
codegen_flags: <defaults>
</compile_context>

<pallas_src>
import functools

import jax
import jax.numpy as jnp
from jax.experimental import pallas as pl
from jax.experimental.pallas import tpu as pltpu

NEG_SLOPE = 0.2
BN_EPS = 1e-5


def upsample_kernel(x_ref, w_ref, shift_ref, o_ref, *, width):
    # x_ref:     (1, Cin, H*W)      one image; channels on sublanes, (h,w) flattened on lanes
    # w_ref:     (4*Cout, Cin)      fused conv taps (rows tap-major), BN scale folded in
    # shift_ref: (Cout, 1)          folded BN shift (includes conv bias)
    # o_ref:     (1, 2, Cout, H*W)  plane 0 = even output rows, plane 1 = odd output rows
    x = x_ref[0]                                                       # (Cin, HW)

    # Single fused MXU matmul for all 4 taps: (4*Cout, Cin) @ (Cin, HW) -> (4*Cout, HW)
    y = jnp.dot(w_ref[...], x, preferred_element_type=jnp.float32)

    cout = shift_ref.shape[0]
    hw = x.shape[-1]
    y0 = y[0 * cout:1 * cout]
    y1 = y[1 * cout:2 * cout]
    y2 = y[2 * cout:3 * cout]
    y3 = y[3 * cout:4 * cout]

    # ConvTranspose2d(k=(4,1), s=(2,1), p=(1,0)) index algebra (oh = 2*ih - 1 + kh):
    #   even rows oh=2m  : tap1[m] + tap3[m-1]
    #   odd  rows oh=2m+1: tap2[m] + tap0[m+1]
    # A +/-1 shift in h is a +/-`width` shift along the flattened (h,w) lane axis.
    lane = jax.lax.broadcasted_iota(jnp.int32, (cout, hw), 1)
    y3_up = jnp.where(lane >= width, pltpu.roll(y3, shift=width, axis=1), 0.0)
    y0_dn = jnp.where(lane < hw - width, pltpu.roll(y0, shift=hw - width, axis=1), 0.0)

    shift = shift_ref[...]                                             # (Cout, 1) lane-broadcast
    even = y1 + y3_up + shift
    odd = y2 + y0_dn + shift
    o_ref[0, 0] = jnp.where(even > 0, even, NEG_SLOPE * even).astype(o_ref.dtype)
    o_ref[0, 1] = jnp.where(odd > 0, odd, NEG_SLOPE * odd).astype(o_ref.dtype)


def upsample_forward(x, weight, conv_bias, gamma, beta, running_mean, running_var):
    """x: (N, Cin, H, W) NCHW. weight: (Cin, Cout, 4, 1) (PyTorch ConvTranspose2d layout)."""
    N, Cin, H, W = x.shape
    Cout = weight.shape[1]
    HW = H * W

    # (N, Cin, H, W) -> (N, Cin, H*W): contiguous reshape, free.
    xk = x.reshape(N, Cin, HW).astype(jnp.float32)

    inv_std = 1.0 / jnp.sqrt(running_var + BN_EPS)
    scale = (gamma * inv_std).astype(jnp.float32)                       # (Cout,)
    # Fold BN scale into the conv weights (conv is linear -> exact).
    # Rows ordered tap-major: row = tap*Cout + co.
    wf = jnp.transpose(weight[:, :, :, 0], (2, 1, 0)) * scale[None, :, None]   # (4, Cout, Cin)
    wf = wf.reshape(4 * Cout, Cin).astype(jnp.float32)
    shift = (beta + (conv_bias - running_mean) * scale).reshape(Cout, 1).astype(jnp.float32)

    out_k = pl.pallas_call(
        functools.partial(upsample_kernel, width=W),
        out_shape=jax.ShapeDtypeStruct((N, 2, Cout, HW), jnp.float32),
        grid_spec=pltpu.PrefetchScalarGridSpec(
            num_scalar_prefetch=0,
            grid=(N,),
            in_specs=[
                pl.BlockSpec((1, Cin, HW), lambda n: (n, 0, 0)),
                pl.BlockSpec((4 * Cout, Cin), lambda n: (0, 0)),
                pl.BlockSpec((Cout, 1), lambda n: (0, 0)),
            ],
            out_specs=pl.BlockSpec((1, 2, Cout, HW), lambda n: (n, 0, 0, 0)),
        ),
        compiler_params=pltpu.CompilerParams(dimension_semantics=("parallel",)),
    )(xk, wf, shift)

    # (N, 2, Cout, H*W) -> (N, Cout, 2H, W): interleave even/odd rows in the wrapper
    # (layout plumbing handled by XLA, fuses with surrounding ops).
    out = out_k.reshape(N, 2, Cout, H, W)
    return jnp.transpose(out, (0, 2, 3, 1, 4)).reshape(N, Cout, 2 * H, W)


def upsample_reference(x, weight, conv_bias, gamma, beta, running_mean, running_var):
    """Pure-JAX reference (scatter formulation of ConvTranspose2d + eval BatchNorm + LeakyReLU)."""
    N, Cin, H, W = x.shape
    Cout = weight.shape[1]
    full = jnp.zeros((N, Cout, 2 * H + 2, W), jnp.float32)
    for kh in range(4):
        contrib = jnp.einsum("nihw,io->nohw", x, weight[:, :, kh, 0])
        full = full.at[:, :, kh : kh + 2 * H : 2, :].add(contrib)
    y = full[:, :, 1 : 1 + 2 * H, :] + conv_bias[None, :, None, None]
    inv_std = 1.0 / jnp.sqrt(running_var + BN_EPS)
    y = (y - running_mean[None, :, None, None]) * (gamma * inv_std)[None, :, None, None] \
        + beta[None, :, None, None]
    return jnp.where(y > 0, y, NEG_SLOPE * y)


if __name__ == "__main__":
    key = jax.random.PRNGKey(0)
    k_x, k_w, k_b, k_g, k_beta = jax.random.split(key, 5)

    N, Cin, Cout, H, W = 2, 4, 8, 16, 16

    x = jax.random.normal(k_x, (N, Cin, H, W), jnp.float32)
    # ConvTranspose2d weight shape: (in_channels, out_channels, kH, kW) = (Cin, Cout, 4, 1)
    weight = 0.1 * jax.random.normal(k_w, (Cin, Cout, 4, 1), jnp.float32)
    conv_bias = 0.1 * jax.random.normal(k_b, (Cout,), jnp.float32)
    gamma = 1.0 + 0.1 * jax.random.normal(k_g, (Cout,), jnp.float32)
    beta = 0.1 * jax.random.normal(k_beta, (Cout,), jnp.float32)
    running_mean = jnp.zeros((Cout,), jnp.float32)
    running_var = jnp.ones((Cout,), jnp.float32)

    out = upsample_forward(x, weight, conv_bias, gamma, beta, running_mean, running_var)
    out = jax.block_until_ready(out)

    ref = upsample_reference(x, weight, conv_bias, gamma, beta, running_mean, running_var)
    assert out.shape == (N, Cout, 2 * H, W), out.shape
    assert jnp.allclose(out, ref, atol=1e-4, rtol=1e-4), float(jnp.max(jnp.abs(out - ref)))

    print("KERNEL_OK")
</pallas_src>

<mosaic_0001>
module attributes {stable_mosaic.version = 11 : i64} {
  func.func @upsample_kernel(%arg0: i32, %arg1: memref<1x4x256xf32, #tpu.memory_space<vmem>>, %arg2: memref<32x4xf32, #tpu.memory_space<vmem>>, %arg3: memref<8x1xf32, #tpu.memory_space<vmem>>, %arg4: memref<1x2x8x256xf32, #tpu.memory_space<vmem>>) attributes {dimension_semantics = [#tpu.dimension_semantics<parallel>], iteration_bounds = array<i64: 2>, scalar_prefetch = 0 : i64, scratch_operands = 0 : i64, tpu.core_type = #tpu.core_type<tc>, window_params = [{transform_indices = @transform_0, window_bounds = array<i64: 1, 4, 256>}, {pipeline_mode = #tpu.pipeline_mode<synchronous>, transform_indices = @transform_1, window_bounds = array<i64: 32, 4>}, {pipeline_mode = #tpu.pipeline_mode<synchronous>, transform_indices = @transform_2, window_bounds = array<i64: 8, 1>}, {transform_indices = @transform_3, window_bounds = array<i64: 1, 2, 8, 256>}]} {
    %c0 = arith.constant 0 : index
    %c0_0 = arith.constant 0 : index
    %c0_1 = arith.constant 0 : index
    %0 = vector.load %arg1[%c0, %c0_0, %c0_1] : memref<1x4x256xf32, #tpu.memory_space<vmem>>, vector<1x4x256xf32>
    %1 = vector.shape_cast %0 : vector<1x4x256xf32> to vector<4x256xf32>
    %c0_2 = arith.constant 0 : index
    %c0_3 = arith.constant 0 : index
    %2 = vector.load %arg2[%c0_2, %c0_3] : memref<32x4xf32, #tpu.memory_space<vmem>>, vector<32x4xf32>
    %cst = arith.constant dense<0.000000e+00> : vector<32x256xf32>
    %3 = tpu.matmul %2, %1, %cst {dimension_numbers = #tpu.dot_dimension_numbers<[1], [0], [0], [1], [0, 0, 1, 1], [], []>} : vector<32x4xf32>, vector<4x256xf32>, vector<32x256xf32> -> vector<32x256xf32>
    %4 = vector.extract_strided_slice %3 {offsets = [0, 0], sizes = [8, 256], strides = [1, 1]} : vector<32x256xf32> to vector<8x256xf32>
    %5 = vector.extract_strided_slice %3 {offsets = [8, 0], sizes = [8, 256], strides = [1, 1]} : vector<32x256xf32> to vector<8x256xf32>
    %6 = vector.extract_strided_slice %3 {offsets = [16, 0], sizes = [8, 256], strides = [1, 1]} : vector<32x256xf32> to vector<8x256xf32>
    %7 = vector.extract_strided_slice %3 {offsets = [24, 0], sizes = [8, 256], strides = [1, 1]} : vector<32x256xf32> to vector<8x256xf32>
    %8 = tpu.iota {dimensions = array<i32: 1>} : vector<8x256xi32>
    %c16_i32 = arith.constant 16 : i32
    %9 = vector.broadcast %c16_i32 : i32 to vector<8x256xi32>
    %10 = arith.cmpi sge, %8, %9 : vector<8x256xi32>
    %c16_i32_4 = arith.constant 16 : i32
    %11 = tpu.dynamic_rotate %7 by %c16_i32_4 dim 1 : vector<8x256xf32>, i32 -> vector<8x256xf32>
    %cst_5 = arith.constant 0.000000e+00 : f32
    %12 = vector.broadcast %cst_5 : f32 to vector<8x256xf32>
    %13 = arith.select %10, %11, %12 : vector<8x256xi1>, vector<8x256xf32>
    %c240_i32 = arith.constant 240 : i32
    %14 = vector.broadcast %c240_i32 : i32 to vector<8x256xi32>
    %15 = arith.cmpi slt, %8, %14 : vector<8x256xi32>
    %c240_i32_6 = arith.constant 240 : i32
    %16 = tpu.dynamic_rotate %4 by %c240_i32_6 dim 1 : vector<8x256xf32>, i32 -> vector<8x256xf32>
    %cst_7 = arith.constant 0.000000e+00 : f32
    %17 = vector.broadcast %cst_7 : f32 to vector<8x256xf32>
    %18 = arith.select %15, %16, %17 : vector<8x256xi1>, vector<8x256xf32>
    %c0_8 = arith.constant 0 : index
    %c0_9 = arith.constant 0 : index
    %19 = vector.load %arg3[%c0_8, %c0_9] : memref<8x1xf32, #tpu.memory_space<vmem>>, vector<8x1xf32>
    %20 = arith.addf %5, %13 : vector<8x256xf32>
    %21 = vector.broadcast %19 : vector<8x1xf32> to vector<8x256xf32>
    %22 = arith.addf %20, %21 : vector<8x256xf32>
    %23 = arith.addf %6, %18 : vector<8x256xf32>
    %24 = vector.broadcast %19 : vector<8x1xf32> to vector<8x256xf32>
    %25 = arith.addf %23, %24 : vector<8x256xf32>
    %cst_10 = arith.constant 0.000000e+00 : f32
    %26 = vector.broadcast %cst_10 : f32 to vector<8x256xf32>
    %27 = arith.cmpf ogt, %22, %26 : vector<8x256xf32>
    %cst_11 = arith.constant 2.000000e-01 : f32
    %28 = vector.broadcast %cst_11 : f32 to vector<8x256xf32>
    %29 = arith.mulf %28, %22 : vector<8x256xf32>
    %30 = arith.select %27, %22, %29 : vector<8x256xi1>, vector<8x256xf32>
    %c0_12 = arith.constant 0 : index
    %c0_13 = arith.constant 0 : index
    %c0_14 = arith.constant 0 : index
    %c0_15 = arith.constant 0 : index
    %31 = vector.load %arg4[%c0_12, %c0_13, %c0_14, %c0_15] : memref<1x2x8x256xf32, #tpu.memory_space<vmem>>, vector<1x1x8x256xf32>
    %32 = vector.shape_cast %31 : vector<1x1x8x256xf32> to vector<8x256xf32>
    %33 = vector.shape_cast %30 : vector<8x256xf32> to vector<1x1x8x256xf32>
    tpu.vector_store %arg4[%c0_12, %c0_13, %c0_14, %c0_15], %33 {strides = array<i32>} : memref<1x2x8x256xf32, #tpu.memory_space<vmem>>, vector<1x1x8x256xf32>,
    %cst_16 = arith.constant 0.000000e+00 : f32
    %34 = vector.broadcast %cst_16 : f32 to vector<8x256xf32>
    %35 = arith.cmpf ogt, %25, %34 : vector<8x256xf32>
    %cst_17 = arith.constant 2.000000e-01 : f32
    %36 = vector.broadcast %cst_17 : f32 to vector<8x256xf32>
    %37 = arith.mulf %36, %25 : vector<8x256xf32>
    %38 = arith.select %35, %25, %37 : vector<8x256xi1>, vector<8x256xf32>
    %c0_18 = arith.constant 0 : index
    %c1 = arith.constant 1 : index
    %c0_19 = arith.constant 0 : index
    %c0_20 = arith.constant 0 : index
    %39 = vector.load %arg4[%c0_18, %c1, %c0_19, %c0_20] : memref<1x2x8x256xf32, #tpu.memory_space<vmem>>, vector<1x1x8x256xf32>
    %40 = vector.shape_cast %39 : vector<1x1x8x256xf32> to vector<8x256xf32>
    %41 = vector.shape_cast %38 : vector<8x256xf32> to vector<1x1x8x256xf32>
    tpu.vector_store %arg4[%c0_18, %c1, %c0_19, %c0_20], %41 {strides = array<i32>} : memref<1x2x8x256xf32, #tpu.memory_space<vmem>>, vector<1x1x8x256xf32>,
    return
  }
  func.func @transform_0(%arg0: i32) -> (i32, i32, i32) {
    %c0_i32 = arith.constant 0 : i32
    %c0_i32_0 = arith.constant 0 : i32
    %c0_i32_1 = arith.constant 0 : i32
    return %arg0, %c0_i32, %c0_i32_0 : i32, i32, i32
  }
  func.func @transform_1(%arg0: i32) -> (i32, i32) {
    %c0_i32 = arith.constant 0 : i32
    %c0_i32_0 = arith.constant 0 : i32
    %c0_i32_1 = arith.constant 0 : i32
    return %c0_i32, %c0_i32_0 : i32, i32
  }
  func.func @transform_2(%arg0: i32) -> (i32, i32) {
    %c0_i32 = arith.constant 0 : i32
    %c0_i32_0 = arith.constant 0 : i32
    %c0_i32_1 = arith.constant 0 : i32
    return %c0_i32, %c0_i32_0 : i32, i32
  }
  func.func @transform_3(%arg0: i32) -> (i32, i32, i32, i32) {
    %c0_i32 = arith.constant 0 : i32
    %c0_i32_0 = arith.constant 0 : i32
    %c0_i32_1 = arith.constant 0 : i32
    %c0_i32_2 = arith.constant 0 : i32
    return %arg0, %c0_i32, %c0_i32_0, %c0_i32_1 : i32, i32, i32, i32
  }
}

</mosaic_0001>

<bundles_post_ra>
// kernel: tpu_custom_call.1
= control target key start
LH: loop header
LB: loop body
LE: loop exit
PB: predicated region body
PF: predicated region fallthrough
CT: control target
= control target key end

     0   :  { %8 = vsyncpa [#allocation3], 0  ;;  %s697_s0 = inlined_call_operand.vmem [shape: f32[2,4,256], index: 0, kind: input, shape index: {}]   ;;  %s698_s1 = inlined_call_operand.vmem [shape: f32[32,4], index: 1, kind: input, shape index: {}]   ;;  %s699_s2 = inlined_call_operand.vmem [shape: f32[8,1], index: 2, kind: input, shape index: {}]   ;;  %s700_s3 = inlined_call_operand.hbm [shape: f32[2,2,8,256], index: 3, kind: output, shape index: {}]  }
   0x1   :  { %10 = vsyncpa [#allocation3 + $0x1], 0  ;;  %s573_s12 = smov 0   ;;  %s575_s13 = smov 0  }
   0x2   :  { %s577_s14 = smov 0   ;;  %s579_s15 = smov 0  }
   0x3 LB: > { %s594_s16 = sadd.s32 4294967295, %s545_s15   ;;  %s415_s17 = sadd.s32 4294967294, %s545_s15   ;;  %s545_s15 = sphi %s579_s15, %s706_s15   ;;  %s541_s14 = sphi %s577_s14, %s705_s14   ;;  %s537_s13 = sphi %s575_s13, %s704_s13   ;;  %s533_s12 = sphi %s573_s12, %s703_s12  }
   0x4   : > { %s598_s18 = sadd.s32 1, %s545_s15   ;;  %s91_s19 = sadd.s32 1, %s541_s14 }
   0x5   : > { %s88_s20 = ssub.s32 %s545_s15, %s598_s18  ;;  %p101_p0 = scmp.ne.s32.totalorder %s541_s14, %s537_s13 }
   0x6   : > { %p89_p1 = scmp.eq.s32.totalorder %s88_s20, 0  ;;  %p102_p2 = scmp.eq.s32.totalorder %s594_s16, 1 }
   0x7   : > { %p107_p3 = scmp.ne.s32.totalorder %s537_s13, %s533_s12  ;;  %p108_p4 = scmp.eq.s32.totalorder %s415_s17, 1 }
   0x8   : > { %s609_s21 = scalar_select %p89_p1, %s541_s14, %s91_s19  }
   0x9   : > { %p611_p5 = por %p102_p2, %p101_p0  ;;  %p615_p6 = por %p108_p4, %p107_p3 }
   0xa   : > { %p418_p7 = scmp.ge.s32.totalorder %s545_s15, 1  ;;  %p140_p8 = scmp.lt.s32.totalorder %s545_s15, 3 }
   0xc   : > { %p141_p9 = pnand %p418_p7, %p140_p8 }
   0xd   : > { %p164_p10 = scmp.lt.s32.totalorder (!%p141_p9), %s594_s16, 1  ;;  %s549_s17 = smov (!%p141_p9), 16  }
   0xe   : > { %144 = sbr.rel (%p141_p9) target bundleno = 369 (0x171), region = 32  ;;  %s550_s19 = smov (!%p141_p9), 112  }
   0xf   : > { %s161_s20 = sand.u32 (!%p141_p9), 1, %s537_s13   ;;  %s436_s25 = sshll.u32 (!%p141_p9), %s594_s16, 9 }
  0x10   : > { %s419_s24 = sshll.u32 (!%p141_p9), %s161_s20, 5  ;;  %s551_s5 = smov (!%p141_p9), [#allocation2]  }
  0x11   : > { %s489_s6 = sshll.u32 (!%p141_p9), %s551_s5, 4  ;;  %s490_s6 = int_to_ptr.vmem [resolvable:$false] %s489_s6 }
  0x12   : > { %s491_s7 = scalar_lea.vmem (!%p141_p9), %s490_s6, 1024 }
  0x13   : > { %v547_v0 = vmov 0.0   ;;  %v308_v1 = vld [vmem:[%s699_s2] sm:$0xff]  ;;  %s165_s26 = scalar_select %p164_p10, %s594_s16, 1  ;;  %v548_v2 = vmov 0   ;;  %vm189_vm0 = vcmask 1043456   ;;  %v172_v5 = vld [vmem:[%s698_s1 + $0x10] sm:$0xff]  ;;  %v283_v15 = vlaneseq }
  0x14   : > { %270 = vmatprep.mubr.f32.mxu1 %v547_v0  ;;  %258 = vmatprep.mubr.f32.mxu0 %v547_v0  ;;  %vm176_vm1 = vcmask 31744   ;;  %v170_v6 = vld [vmem:[%s698_s1] sm:$0xff]  ;;  %v173_v7 = vld [vmem:[%s698_s1 + $0x18] sm:$0xff]  ;;  %v171_v8 = vld [vmem:[%s698_s1 + $0x8] sm:$0xff]  ;;  %s656_s16 = scalar_lea.sflag [#allocation3], %s161_s20 }
  0x15   : > { %483 = vset.pattern.permute.xlu0 %v548_v2  ;;  %s435_s27 = sshll.u32 %s165_s26, 3  ;;  %v284_v17 = vand.u32 127, %v283_v15  ;;  %s163_s26 = scalar_lea.vmem [#allocation2], %s419_s24 }
  0x16   : > { %313 = vperm.xlu0 %483, %v308_v1   ;;  %s168_s30 = scalar_lea.vmem %s697_s0, %s435_s27  ;;  %s353_s27 = sshll.u32 %s163_s26, 4  ;;  %s652_s27 = int_to_ptr.vmem [resolvable:$true] %s353_s27 }
  0x17   : > { %v169_v3 = vld [vmem:[%s168_s30] sm:$0xff]  ;;  %vm292_vm2 = vcmp.lt.s32.totalorder %v284_v17, 16  ;;  %vm286_vm3 = vcmp.ge.s32.totalorder %v284_v17, 16  ;;  %v285_v21 = vadd.s32 128, %v284_v17  ;;  %vm303_vm4 = vcmp.lt.s32.totalorder %v284_v17, 112  ;;  %s650_s30 = scalar_lea.hbm %s700_s3, %s436_s25  ;;  %s485_s4 = scalar_lea.vmem %s652_s27, 512 }
  0x18   : > { %v175_v4 = vcombine.high %v169_v3, %v169_v3  ;;  %p486_p11 = scmp.ne.s32.totalorder %s652_s27, %s485_s4  ;;  %p492_p0 = scmp.lt.s32.totalorder %s652_s27, %s490_s6 }
  0x19   : > { %vm298_vm5 = vcmp.lt.s32.totalorder %v285_v21, 240  ;;  %p493_p1 = scmp.lt.s32.totalorder %s491_s7, %s485_s4 }
  0x1a   : > { %437 = vmatprep.subr.msk.mxu1 %vm189_vm0, %v175_v4  ;;  %422 = vmatprep.subr.msk.mxu0 %vm189_vm0, %v175_v4  ;;  %p487_p12 = pnand %p486_p11, %p611_p5 }
  0x1b   : > { %438 = vmatpush1.msk.msra.mxu1 %vm189_vm0, %v169_v3  ;;  %423 = vmatpush1.msk.msra.mxu0 %vm189_vm0, %v169_v3  ;;  %p494_p2 = por %p493_p1, %p492_p0 }
  0x1c   : > { %426 = vmatmul.mubr.msk.f32.vlgmr.msra.gmra.mxu1 %vm176_vm1, %v172_v5  ;;  %424 = vmatmul.mubr.msk.f32.vlgmr.msra.gmra.mxu0 %vm176_vm1, %v170_v6  ;;  %p488_p13 = pneg %p487_p12 }
  0x1d   : > { %276 = vmatprep.mubr.f32.mxu1 %v547_v0  ;;  %264 = vmatprep.mubr.f32.mxu0 %v547_v0 }
  0x1e   : > { %p495_p3 = pnand %p494_p2, %p488_p13 }
  0x20   : > { %427 = vmatmul.mubr.msk.f32.gmra.mxu1 %vm176_vm1, %v173_v7  ;;  %425 = vmatmul.mubr.msk.f32.gmra.mxu0 %vm176_vm1, %v171_v8 }
  0x91   : > { %v314_v16 = vpop.permute.xlu0 %313 }
  0xdc   : > { %v272_v9 = vpop.f32.mrf.mxu1  ;;  %v260_v11 = vpop.f32.mrf.mxu0 }
  0xde   : > { %v274_v10 = vpop.f32.mrf.mxu1  ;;  %v262_v14 = vpop.f32.mrf.mxu0 }
  0xe0   : > { %v278_v12 = vpop.f32.mrf.mxu1  ;;  %v266_v18 = vpop.f32.mrf.mxu0 }
  0xe1   : > { %288 = vrot.lane.b32.xlu0 %v278_v12, %s549_s17 }
  0xe2   : > { %v280_v13 = vpop.f32.mrf.mxu1  ;;  %v268_v20 = vpop.f32.mrf.mxu0 }
  0xe3   : > { %290 = vrot.lane.b32.xlu1 %v280_v13, %s549_s17 }
  0xe5   : > { %301 = vrot.lane.b32.xlu0 %v262_v14, %s550_s19 }
  0xe7   : > { %299 = vrot.lane.b32.xlu1 %v260_v11, %s550_s19 }
 0x153   : > { %v289_v19 = vpop.permute.xlu0 %288 }
 0x155   : > { %v291_v22 = vpop.permute.xlu1 %290 }
 0x156   : > { %v294_v23 = vsel %vm292_vm2, %v291_v22, %v289_v19  ;;  %v293_v24 = vsel %vm292_vm2, %v289_v19, %v291_v22 }
 0x157   : > { %v295_v25 = vsel %vm286_vm3, %v294_v23, 0.0  ;;  %v310_v26 = vadd.f32 %v293_v24, %v268_v20  ;;  %v302_v29 = vpop.permute.xlu0 %301 }
 0x158   : > { %v309_v27 = vadd.f32 %v295_v25, %v266_v18 }
 0x159   : > { %v317_v28 = vadd.f32 %v314_v16, %v310_v26  ;;  %v300_v30 = vpop.permute.xlu1 %299 }
 0x15a   : > { %v316_v31 = vadd.f32 %v314_v16, %v309_v27  ;;  %v304_v32 = vsel %vm303_vm4, %v300_v30, %v302_v29  ;;  %v305_v33 = vsel %vm303_vm4, %v302_v29, %v300_v30 }
 0x15b   : > { %vm323_vm6 = vcmp.gt.f32.partialorder %v317_v28, 0.0  ;;  %v325_v34 = vmul.f32 0.2, %v317_v28  ;;  %v307_v35 = vsel %vm298_vm5, %v305_v33, 0.0  ;;  %v318_v36 = vadd.f32 %v304_v32, %v272_v9 }
 0x15c   : > { %vm322_vm7 = vcmp.gt.f32.partialorder %v316_v31, 0.0  ;;  %v324_v37 = vmul.f32 0.2, %v316_v31  ;;  %v319_v38 = vadd.f32 %v307_v35, %v274_v10 }
 0x15d   : > { %v327_v39 = vsel %vm323_vm6, %v317_v28, %v325_v34  ;;  %v320_v40 = vadd.f32 %v318_v36, %v314_v16 }
 0x15e   : > { %v326_v41 = vsel %vm322_vm7, %v316_v31, %v324_v37  ;;  %329 = vst [vmem:[%s163_s26 + $0x8] sm:$0xff] %v327_v39  ;;  %v321_v42 = vadd.f32 %v319_v38, %v314_v16 }
 0x15f   : > { %328 = vst [vmem:[%s163_s26] sm:$0xff] %v326_v41  ;;  %vm330_vm8 = vcmp.gt.f32.partialorder %v320_v40, 0.0  ;;  %v332_v43 = vmul.f32 0.2, %v320_v40 }
 0x160   : > { %vm331_vm9 = vcmp.gt.f32.partialorder %v321_v42, 0.0  ;;  %v333_v44 = vmul.f32 0.2, %v321_v42 }
 0x161   : > { %v334_v45 = vsel %vm330_vm8, %v320_v40, %v332_v43 }
 0x162   : > { %v335_v46 = vsel %vm331_vm9, %v321_v42, %v333_v44  ;;  %428 = vst [vmem:[%s163_s26 + $0x10] sm:$0xff] %v334_v45 }
 0x163   : > { %429 = vst [vmem:[%s163_s26 + $0x18] sm:$0xff] %v335_v46 }
 0x164   : > { %498 = shalt.err (!%p495_p3)
}
 0x165   : > { %s499_s8 = scalar_lea.hbm %s650_s30, 512  ;;  %s503_s11 = scalar_lea.hbm %s700_s3, 1024 }
 0x166   : > { %p500_p4 = scmp.ne.s32.totalorder %s650_s30, %s499_s8  ;;  %p504_p9 = scmp.lt.s32.totalorder %s650_s30, %s700_s3 }
 0x167   : > { %p505_p10 = scmp.lt.s32.totalorder %s503_s11, %s499_s8 }
 0x168   : > { %p501_p7 = pnand %p500_p4, %p611_p5 }
 0x169   : > { %p506_p11 = por %p505_p10, %p504_p9 }
 0x16a   : > { %p502_p8 = pneg %p501_p7 }
 0x16c   : > { %p507_p12 = pnand %p506_p11, %p502_p8 }
 0x16e   : > { %510 = shalt.err (!%p507_p12)
}
 0x16f   : > { %s552_s24 = smov 256  }
 0x170   : > { %439 = dma.vmem_to_hbm [thread:$0]  (%p611_p5), %s652_s27, 512, %s650_s30, %s656_s16, %s552_s24, %s552_s24, %s549_s17  }
 0x171 PF: > { %p445_p13 = scmp.ge.s32.totalorder %s545_s15, 2  ;;  %s368_s25 = sand.u32 1, %s533_s12  }
 0x172   : > { %s369_s26 = scalar_lea.sflag [#allocation3], %s368_s25 }
 0x173   : > { %p442_p0 = pnand %p445_p13, %p615_p6 }
 0x175   : > { %p443_p1 = pneg %p442_p0 }
 0x177   : > { %528 = dma.done.wait (%p443_p1), %s369_s26, 512  }
 0x178   : > { %530 = vsyncadd (%p443_p1), %s369_s26, 4294966784  ;;  %p13_p2 = scmp.ge.s32.totalorder %s598_s18, 4   ;;  %s703_s12 = smov %s537_s13 }
 0x179   : > { %s704_s13 = smov %s541_s14  ;;  %s705_s14 = smov %s609_s21 }
 0x17a   : > { %s706_s15 = smov %s598_s18  ;;  %15 = sbr.rel (!%p13_p2) target bundleno = 3 (0x3), region = 68 }
 0x17f   :  { %374 = vsyncpa [#allocation3], 1 }
 0x180   :  { %376 = vsyncpa [#allocation3 + $0x1], 1 }

</bundles_post_ra>
